<compile_context>
chip_gen: v7x
topology: tpu7x:2x2x1
jax: 0.10.0
libtpu: 0.0.40
codegen_flags: <defaults>
</compile_context>

<pallas_src>
from functools import partial

import jax
import jax.numpy as jnp
from jax.experimental import pallas as pl
from jax.experimental.pallas import tpu as pltpu


def _make_compl_mul_kernel(B, Cin, Cout):
    """out[b*Cout+o, m] = sum_i a[b*Cin+i, m] * w[i*Cout+o, m]   (complex)."""

    def kernel(ar_ref, ai_ref, wr_ref, wi_ref, or_ref, oi_ref):
        TM = ar_ref.shape[-1]
        # Cin and B are small (statically unrolled); accumulators are bounded
        # to [Cout, TM] per batch row-group and written to VMEM once.
        for b in range(B):
            acc_r = jnp.zeros((Cout, TM), jnp.float32)
            acc_i = jnp.zeros((Cout, TM), jnp.float32)
            for i in range(Cin):
                a_r = ar_ref[pl.ds(b * Cin + i, 1), :]   # [1, TM]
                a_i = ai_ref[pl.ds(b * Cin + i, 1), :]   # [1, TM]
                w_r = wr_ref[pl.ds(i * Cout, Cout), :]   # [Cout, TM]
                w_i = wi_ref[pl.ds(i * Cout, Cout), :]   # [Cout, TM]
                # (a_r + j a_i) * (w_r + j w_i)
                acc_r = acc_r + a_r * w_r - a_i * w_i
                acc_i = acc_i + a_r * w_i + a_i * w_r
            or_ref[pl.ds(b * Cout, Cout), :] = acc_r
            oi_ref[pl.ds(b * Cout, Cout), :] = acc_i

    return kernel


def _spectral_mul(a_r, a_i, w_r, w_i, B, Cin, Cout):
    """Fused (top+bot) complex mode-wise channel contraction.

    a_r/a_i: [2, B*Cin,    Mp]   float32   (Mp multiple of 128, zero padded)
    w_r/w_i: [2, Cin*Cout, Mp]   float32
    returns  ([2, B*Cout, Mp], [2, B*Cout, Mp])
    """
    S, BCin, Mp = a_r.shape
    CinCout = Cin * Cout
    BCout = B * Cout

    # Largest lane tile <= 512 that divides Mp (Mp is a multiple of 128).
    TM = max(t for t in (512, 256, 128) if Mp % t == 0)
    grid = (S, Mp // TM)

    a_spec = pl.BlockSpec((None, BCin, TM), lambda s, m: (s, 0, m))
    w_spec = pl.BlockSpec((None, CinCout, TM), lambda s, m: (s, 0, m))
    o_spec = pl.BlockSpec((None, BCout, TM), lambda s, m: (s, 0, m))

    out_shape = (
        jax.ShapeDtypeStruct((S, BCout, Mp), jnp.float32),
        jax.ShapeDtypeStruct((S, BCout, Mp), jnp.float32),
    )

    return pl.pallas_call(
        _make_compl_mul_kernel(B, Cin, Cout),
        out_shape=out_shape,
        grid=grid,
        in_specs=[a_spec, a_spec, w_spec, w_spec],
        out_specs=(o_spec, o_spec),
        compiler_params=pltpu.CompilerParams(
            # Both axes independent: megacore-shardable on v7x, harmless on
            # v5e/v6e.  Explicit VMEM cap keeps the tiling honest on v7x.
            dimension_semantics=("parallel", "parallel"),
            vmem_limit_bytes=32 * 1024 * 1024,
        ),
    )(a_r, a_i, w_r, w_i)


@partial(jax.jit, static_argnums=(5, 6))
def spectral_conv2d(x, w1r, w1i, w2r, w2i, modes1, modes2):
    """Forward pass of SpectralConv2d.

    x:   [B, C_in, H, W] float32 (NCHW)
    w*:  [C_in, C_out, modes1, modes2] float32 (real / imag parts of cfloat weights)
    returns [B, C_out, H, W] float32

    Note: as in the PyTorch module, if modes1 > H//2 the two frequency blocks
    overlap and the second assignment wins.
    """
    B, Cin, H, W = x.shape
    Cout = w1r.shape[1]
    Wf = W // 2 + 1
    M = modes1 * modes2
    Mp = -(-M // 128) * 128          # lane-dense padding (multiple of 128)

    # TODO(synk): rfft2/irfft2 have no Pallas TPU primitive; done in XLA.
    x_ft = jnp.fft.rfft2(x)                                  # [B, Cin, H, Wf] c64

    top = x_ft[:, :, :modes1, :modes2]                       # low positive freqs
    bot = x_ft[:, :, -modes1:, :modes2]                      # low negative freqs

    # Stack top/bot on a leading axis and flatten to sublane-dense 2D planes.
    a = jnp.stack([top, bot], axis=0).reshape(2, B * Cin, M)     # complex64
    a_r = jnp.real(a).astype(jnp.float32)
    a_i = jnp.imag(a).astype(jnp.float32)

    w_r = jnp.stack([w1r, w2r], axis=0).reshape(2, Cin * Cout, M).astype(jnp.float32)
    w_i = jnp.stack([w1i, w2i], axis=0).reshape(2, Cin * Cout, M).astype(jnp.float32)

    if Mp != M:
        pad = ((0, 0), (0, 0), (0, Mp - M))
        a_r = jnp.pad(a_r, pad)
        a_i = jnp.pad(a_i, pad)
        w_r = jnp.pad(w_r, pad)      # zero padding -> padded lanes stay zero
        w_i = jnp.pad(w_i, pad)

    o_r, o_i = _spectral_mul(a_r, a_i, w_r, w_i, B, Cin, Cout)

    out = (o_r[:, :, :M] + 1j * o_i[:, :, :M]).astype(jnp.complex64)
    out = out.reshape(2, B, Cout, modes1, modes2)

    out_ft = jnp.zeros((B, Cout, H, Wf), jnp.complex64)
    out_ft = out_ft.at[:, :, :modes1, :modes2].set(out[0])
    out_ft = out_ft.at[:, :, -modes1:, :modes2].set(out[1])

    return jnp.fft.irfft2(out_ft, s=(H, W)).astype(jnp.float32)


def _reference(x, w1r, w1i, w2r, w2i, modes1, modes2):
    """Pure-JAX reference mirroring the PyTorch forward (correctness check)."""
    B, Cin, H, W = x.shape
    Cout = w1r.shape[1]
    w1 = (w1r + 1j * w1i).astype(jnp.complex64)
    w2 = (w2r + 1j * w2i).astype(jnp.complex64)
    x_ft = jnp.fft.rfft2(x)
    out_ft = jnp.zeros((B, Cout, H, W // 2 + 1), jnp.complex64)
    out_ft = out_ft.at[:, :, :modes1, :modes2].set(
        jnp.einsum('bixy,ioxy->boxy', x_ft[:, :, :modes1, :modes2], w1))
    out_ft = out_ft.at[:, :, -modes1:, :modes2].set(
        jnp.einsum('bixy,ioxy->boxy', x_ft[:, :, -modes1:, :modes2], w2))
    return jnp.fft.irfft2(out_ft, s=(H, W)).astype(jnp.float32)


if __name__ == "__main__":
    # SpectralConv2d(in_channels=4, out_channels=4, modes1=4, modes2=4)
    B, Cin, Cout, H, W = 2, 4, 4, 16, 16
    modes1, modes2 = 4, 4
    scale = 1.0 / (Cin * Cout)

    key = jax.random.PRNGKey(0)
    kx, k1r, k1i, k2r, k2i = jax.random.split(key, 5)

    x = jax.random.normal(kx, (B, Cin, H, W), dtype=jnp.float32)
    # torch.rand(..., dtype=cfloat): real & imag parts uniform in [0, 1), scaled.
    w1r = scale * jax.random.uniform(k1r, (Cin, Cout, modes1, modes2), dtype=jnp.float32)
    w1i = scale * jax.random.uniform(k1i, (Cin, Cout, modes1, modes2), dtype=jnp.float32)
    w2r = scale * jax.random.uniform(k2r, (Cin, Cout, modes1, modes2), dtype=jnp.float32)
    w2i = scale * jax.random.uniform(k2i, (Cin, Cout, modes1, modes2), dtype=jnp.float32)

    out = spectral_conv2d(x, w1r, w1i, w2r, w2i, modes1, modes2)
    out = jax.block_until_ready(out)

    ref = jax.block_until_ready(_reference(x, w1r, w1i, w2r, w2i, modes1, modes2))
    assert out.shape == (B, Cout, H, W)
    assert jnp.max(jnp.abs(out - ref)) < 1e-4, "mismatch vs pure-JAX reference"

    print("KERNEL_OK")
</pallas_src>

<mosaic_0001>
module attributes {stable_mosaic.version = 11 : i64} {
  func.func @kernel(%arg0: i32, %arg1: i32, %arg2: memref<1x8x128xf32, #tpu.memory_space<vmem>>, %arg3: memref<1x8x128xf32, #tpu.memory_space<vmem>>, %arg4: memref<1x16x128xf32, #tpu.memory_space<vmem>>, %arg5: memref<1x16x128xf32, #tpu.memory_space<vmem>>, %arg6: memref<1x8x128xf32, #tpu.memory_space<vmem>>, %arg7: memref<1x8x128xf32, #tpu.memory_space<vmem>>) attributes {dimension_semantics = [#tpu.dimension_semantics<parallel>, #tpu.dimension_semantics<parallel>], iteration_bounds = array<i64: 2, 1>, scalar_prefetch = 0 : i64, scratch_operands = 0 : i64, tpu.core_type = #tpu.core_type<tc>, window_params = [{transform_indices = @transform_0, window_bounds = array<i64: 1, 8, 128>}, {transform_indices = @transform_1, window_bounds = array<i64: 1, 8, 128>}, {transform_indices = @transform_2, window_bounds = array<i64: 1, 16, 128>}, {transform_indices = @transform_3, window_bounds = array<i64: 1, 16, 128>}, {transform_indices = @transform_4, window_bounds = array<i64: 1, 8, 128>}, {transform_indices = @transform_5, window_bounds = array<i64: 1, 8, 128>}]} {
    %cst = arith.constant 0.000000e+00 : f32
    %0 = vector.broadcast %cst : f32 to vector<4x128xf32>
    %cst_0 = arith.constant 0.000000e+00 : f32
    %1 = vector.broadcast %cst_0 : f32 to vector<4x128xf32>
    %c0 = arith.constant 0 : index
    %c0_1 = arith.constant 0 : index
    %c0_2 = arith.constant 0 : index
    %2 = vector.load %arg2[%c0, %c0_1, %c0_2] : memref<1x8x128xf32, #tpu.memory_space<vmem>>, vector<1x1x128xf32>
    %3 = vector.shape_cast %2 : vector<1x1x128xf32> to vector<1x128xf32>
    %c0_3 = arith.constant 0 : index
    %c0_4 = arith.constant 0 : index
    %c0_5 = arith.constant 0 : index
    %4 = vector.load %arg3[%c0_3, %c0_4, %c0_5] : memref<1x8x128xf32, #tpu.memory_space<vmem>>, vector<1x1x128xf32>
    %5 = vector.shape_cast %4 : vector<1x1x128xf32> to vector<1x128xf32>
    %c0_6 = arith.constant 0 : index
    %c0_7 = arith.constant 0 : index
    %c0_8 = arith.constant 0 : index
    %6 = vector.load %arg4[%c0_6, %c0_7, %c0_8] : memref<1x16x128xf32, #tpu.memory_space<vmem>>, vector<1x4x128xf32>
    %7 = vector.shape_cast %6 : vector<1x4x128xf32> to vector<4x128xf32>
    %c0_9 = arith.constant 0 : index
    %c0_10 = arith.constant 0 : index
    %c0_11 = arith.constant 0 : index
    %8 = vector.load %arg5[%c0_9, %c0_10, %c0_11] : memref<1x16x128xf32, #tpu.memory_space<vmem>>, vector<1x4x128xf32>
    %9 = vector.shape_cast %8 : vector<1x4x128xf32> to vector<4x128xf32>
    %10 = vector.broadcast %3 : vector<1x128xf32> to vector<4x128xf32>
    %11 = arith.mulf %10, %7 : vector<4x128xf32>
    %12 = arith.addf %0, %11 : vector<4x128xf32>
    %13 = vector.broadcast %5 : vector<1x128xf32> to vector<4x128xf32>
    %14 = arith.mulf %13, %9 : vector<4x128xf32>
    %15 = arith.subf %12, %14 : vector<4x128xf32>
    %16 = vector.broadcast %3 : vector<1x128xf32> to vector<4x128xf32>
    %17 = arith.mulf %16, %9 : vector<4x128xf32>
    %18 = arith.addf %1, %17 : vector<4x128xf32>
    %19 = vector.broadcast %5 : vector<1x128xf32> to vector<4x128xf32>
    %20 = arith.mulf %19, %7 : vector<4x128xf32>
    %21 = arith.addf %18, %20 : vector<4x128xf32>
    %c0_12 = arith.constant 0 : index
    %c1 = arith.constant 1 : index
    %c0_13 = arith.constant 0 : index
    %22 = vector.load %arg2[%c0_12, %c1, %c0_13] : memref<1x8x128xf32, #tpu.memory_space<vmem>>, vector<1x1x128xf32>
    %23 = vector.shape_cast %22 : vector<1x1x128xf32> to vector<1x128xf32>
    %c0_14 = arith.constant 0 : index
    %c1_15 = arith.constant 1 : index
    %c0_16 = arith.constant 0 : index
    %24 = vector.load %arg3[%c0_14, %c1_15, %c0_16] : memref<1x8x128xf32, #tpu.memory_space<vmem>>, vector<1x1x128xf32>
    %25 = vector.shape_cast %24 : vector<1x1x128xf32> to vector<1x128xf32>
    %c0_17 = arith.constant 0 : index
    %c4 = arith.constant 4 : index
    %c0_18 = arith.constant 0 : index
    %26 = vector.load %arg4[%c0_17, %c4, %c0_18] : memref<1x16x128xf32, #tpu.memory_space<vmem>>, vector<1x4x128xf32>
    %27 = vector.shape_cast %26 : vector<1x4x128xf32> to vector<4x128xf32>
    %c0_19 = arith.constant 0 : index
    %c4_20 = arith.constant 4 : index
    %c0_21 = arith.constant 0 : index
    %28 = vector.load %arg5[%c0_19, %c4_20, %c0_21] : memref<1x16x128xf32, #tpu.memory_space<vmem>>, vector<1x4x128xf32>
    %29 = vector.shape_cast %28 : vector<1x4x128xf32> to vector<4x128xf32>
    %30 = vector.broadcast %23 : vector<1x128xf32> to vector<4x128xf32>
    %31 = arith.mulf %30, %27 : vector<4x128xf32>
    %32 = arith.addf %15, %31 : vector<4x128xf32>
    %33 = vector.broadcast %25 : vector<1x128xf32> to vector<4x128xf32>
    %34 = arith.mulf %33, %29 : vector<4x128xf32>
    %35 = arith.subf %32, %34 : vector<4x128xf32>
    %36 = vector.broadcast %23 : vector<1x128xf32> to vector<4x128xf32>
    %37 = arith.mulf %36, %29 : vector<4x128xf32>
    %38 = arith.addf %21, %37 : vector<4x128xf32>
    %39 = vector.broadcast %25 : vector<1x128xf32> to vector<4x128xf32>
    %40 = arith.mulf %39, %27 : vector<4x128xf32>
    %41 = arith.addf %38, %40 : vector<4x128xf32>
    %c0_22 = arith.constant 0 : index
    %c2 = arith.constant 2 : index
    %c0_23 = arith.constant 0 : index
    %42 = vector.load %arg2[%c0_22, %c2, %c0_23] : memref<1x8x128xf32, #tpu.memory_space<vmem>>, vector<1x1x128xf32>
    %43 = vector.shape_cast %42 : vector<1x1x128xf32> to vector<1x128xf32>
    %c0_24 = arith.constant 0 : index
    %c2_25 = arith.constant 2 : index
    %c0_26 = arith.constant 0 : index
    %44 = vector.load %arg3[%c0_24, %c2_25, %c0_26] : memref<1x8x128xf32, #tpu.memory_space<vmem>>, vector<1x1x128xf32>
    %45 = vector.shape_cast %44 : vector<1x1x128xf32> to vector<1x128xf32>
    %c0_27 = arith.constant 0 : index
    %c8 = arith.constant 8 : index
    %c0_28 = arith.constant 0 : index
    %46 = vector.load %arg4[%c0_27, %c8, %c0_28] : memref<1x16x128xf32, #tpu.memory_space<vmem>>, vector<1x4x128xf32>
    %47 = vector.shape_cast %46 : vector<1x4x128xf32> to vector<4x128xf32>
    %c0_29 = arith.constant 0 : index
    %c8_30 = arith.constant 8 : index
    %c0_31 = arith.constant 0 : index
    %48 = vector.load %arg5[%c0_29, %c8_30, %c0_31] : memref<1x16x128xf32, #tpu.memory_space<vmem>>, vector<1x4x128xf32>
    %49 = vector.shape_cast %48 : vector<1x4x128xf32> to vector<4x128xf32>
    %50 = vector.broadcast %43 : vector<1x128xf32> to vector<4x128xf32>
    %51 = arith.mulf %50, %47 : vector<4x128xf32>
    %52 = arith.addf %35, %51 : vector<4x128xf32>
    %53 = vector.broadcast %45 : vector<1x128xf32> to vector<4x128xf32>
    %54 = arith.mulf %53, %49 : vector<4x128xf32>
    %55 = arith.subf %52, %54 : vector<4x128xf32>
    %56 = vector.broadcast %43 : vector<1x128xf32> to vector<4x128xf32>
    %57 = arith.mulf %56, %49 : vector<4x128xf32>
    %58 = arith.addf %41, %57 : vector<4x128xf32>
    %59 = vector.broadcast %45 : vector<1x128xf32> to vector<4x128xf32>
    %60 = arith.mulf %59, %47 : vector<4x128xf32>
    %61 = arith.addf %58, %60 : vector<4x128xf32>
    %c0_32 = arith.constant 0 : index
    %c3 = arith.constant 3 : index
    %c0_33 = arith.constant 0 : index
    %62 = vector.load %arg2[%c0_32, %c3, %c0_33] : memref<1x8x128xf32, #tpu.memory_space<vmem>>, vector<1x1x128xf32>
    %63 = vector.shape_cast %62 : vector<1x1x128xf32> to vector<1x128xf32>
    %c0_34 = arith.constant 0 : index
    %c3_35 = arith.constant 3 : index
    %c0_36 = arith.constant 0 : index
    %64 = vector.load %arg3[%c0_34, %c3_35, %c0_36] : memref<1x8x128xf32, #tpu.memory_space<vmem>>, vector<1x1x128xf32>
    %65 = vector.shape_cast %64 : vector<1x1x128xf32> to vector<1x128xf32>
    %c0_37 = arith.constant 0 : index
    %c12 = arith.constant 12 : index
    %c0_38 = arith.constant 0 : index
    %66 = vector.load %arg4[%c0_37, %c12, %c0_38] : memref<1x16x128xf32, #tpu.memory_space<vmem>>, vector<1x4x128xf32>
    %67 = vector.shape_cast %66 : vector<1x4x128xf32> to vector<4x128xf32>
    %c0_39 = arith.constant 0 : index
    %c12_40 = arith.constant 12 : index
    %c0_41 = arith.constant 0 : index
    %68 = vector.load %arg5[%c0_39, %c12_40, %c0_41] : memref<1x16x128xf32, #tpu.memory_space<vmem>>, vector<1x4x128xf32>
    %69 = vector.shape_cast %68 : vector<1x4x128xf32> to vector<4x128xf32>
    %70 = vector.broadcast %63 : vector<1x128xf32> to vector<4x128xf32>
    %71 = arith.mulf %70, %67 : vector<4x128xf32>
    %72 = arith.addf %55, %71 : vector<4x128xf32>
    %73 = vector.broadcast %65 : vector<1x128xf32> to vector<4x128xf32>
    %74 = arith.mulf %73, %69 : vector<4x128xf32>
    %75 = arith.subf %72, %74 : vector<4x128xf32>
    %76 = vector.broadcast %63 : vector<1x128xf32> to vector<4x128xf32>
    %77 = arith.mulf %76, %69 : vector<4x128xf32>
    %78 = arith.addf %61, %77 : vector<4x128xf32>
    %79 = vector.broadcast %65 : vector<1x128xf32> to vector<4x128xf32>
    %80 = arith.mulf %79, %67 : vector<4x128xf32>
    %81 = arith.addf %78, %80 : vector<4x128xf32>
    %c0_42 = arith.constant 0 : index
    %c0_43 = arith.constant 0 : index
    %c0_44 = arith.constant 0 : index
    %82 = vector.load %arg6[%c0_42, %c0_43, %c0_44] : memref<1x8x128xf32, #tpu.memory_space<vmem>>, vector<1x4x128xf32>
    %83 = vector.shape_cast %82 : vector<1x4x128xf32> to vector<4x128xf32>
    %84 = vector.shape_cast %75 : vector<4x128xf32> to vector<1x4x128xf32>
    tpu.vector_store %arg6[%c0_42, %c0_43, %c0_44], %84 {strides = array<i32>} : memref<1x8x128xf32, #tpu.memory_space<vmem>>, vector<1x4x128xf32>,
    %c0_45 = arith.constant 0 : index
    %c0_46 = arith.constant 0 : index
    %c0_47 = arith.constant 0 : index
    %85 = vector.load %arg7[%c0_45, %c0_46, %c0_47] : memref<1x8x128xf32, #tpu.memory_space<vmem>>, vector<1x4x128xf32>
    %86 = vector.shape_cast %85 : vector<1x4x128xf32> to vector<4x128xf32>
    %87 = vector.shape_cast %81 : vector<4x128xf32> to vector<1x4x128xf32>
    tpu.vector_store %arg7[%c0_45, %c0_46, %c0_47], %87 {strides = array<i32>} : memref<1x8x128xf32, #tpu.memory_space<vmem>>, vector<1x4x128xf32>,
    %cst_48 = arith.constant 0.000000e+00 : f32
    %88 = vector.broadcast %cst_48 : f32 to vector<4x128xf32>
    %cst_49 = arith.constant 0.000000e+00 : f32
    %89 = vector.broadcast %cst_49 : f32 to vector<4x128xf32>
    %c0_50 = arith.constant 0 : index
    %c4_51 = arith.constant 4 : index
    %c0_52 = arith.constant 0 : index
    %90 = vector.load %arg2[%c0_50, %c4_51, %c0_52] : memref<1x8x128xf32, #tpu.memory_space<vmem>>, vector<1x1x128xf32>
    %91 = vector.shape_cast %90 : vector<1x1x128xf32> to vector<1x128xf32>
    %c0_53 = arith.constant 0 : index
    %c4_54 = arith.constant 4 : index
    %c0_55 = arith.constant 0 : index
    %92 = vector.load %arg3[%c0_53, %c4_54, %c0_55] : memref<1x8x128xf32, #tpu.memory_space<vmem>>, vector<1x1x128xf32>
    %93 = vector.shape_cast %92 : vector<1x1x128xf32> to vector<1x128xf32>
    %c0_56 = arith.constant 0 : index
    %c0_57 = arith.constant 0 : index
    %c0_58 = arith.constant 0 : index
    %94 = vector.load %arg4[%c0_56, %c0_57, %c0_58] : memref<1x16x128xf32, #tpu.memory_space<vmem>>, vector<1x4x128xf32>
    %95 = vector.shape_cast %94 : vector<1x4x128xf32> to vector<4x128xf32>
    %c0_59 = arith.constant 0 : index
    %c0_60 = arith.constant 0 : index
    %c0_61 = arith.constant 0 : index
    %96 = vector.load %arg5[%c0_59, %c0_60, %c0_61] : memref<1x16x128xf32, #tpu.memory_space<vmem>>, vector<1x4x128xf32>
    %97 = vector.shape_cast %96 : vector<1x4x128xf32> to vector<4x128xf32>
    %98 = vector.broadcast %91 : vector<1x128xf32> to vector<4x128xf32>
    %99 = arith.mulf %98, %95 : vector<4x128xf32>
    %100 = arith.addf %88, %99 : vector<4x128xf32>
    %101 = vector.broadcast %93 : vector<1x128xf32> to vector<4x128xf32>
    %102 = arith.mulf %101, %97 : vector<4x128xf32>
    %103 = arith.subf %100, %102 : vector<4x128xf32>
    %104 = vector.broadcast %91 : vector<1x128xf32> to vector<4x128xf32>
    %105 = arith.mulf %104, %97 : vector<4x128xf32>
    %106 = arith.addf %89, %105 : vector<4x128xf32>
    %107 = vector.broadcast %93 : vector<1x128xf32> to vector<4x128xf32>
    %108 = arith.mulf %107, %95 : vector<4x128xf32>
    %109 = arith.addf %106, %108 : vector<4x128xf32>
    %c0_62 = arith.constant 0 : index
    %c5 = arith.constant 5 : index
    %c0_63 = arith.constant 0 : index
    %110 = vector.load %arg2[%c0_62, %c5, %c0_63] : memref<1x8x128xf32, #tpu.memory_space<vmem>>, vector<1x1x128xf32>
    %111 = vector.shape_cast %110 : vector<1x1x128xf32> to vector<1x128xf32>
    %c0_64 = arith.constant 0 : index
    %c5_65 = arith.constant 5 : index
    %c0_66 = arith.constant 0 : index
    %112 = vector.load %arg3[%c0_64, %c5_65, %c0_66] : memref<1x8x128xf32, #tpu.memory_space<vmem>>, vector<1x1x128xf32>
    %113 = vector.shape_cast %112 : vector<1x1x128xf32> to vector<1x128xf32>
    %c0_67 = arith.constant 0 : index
    %c4_68 = arith.constant 4 : index
    %c0_69 = arith.constant 0 : index
    %114 = vector.load %arg4[%c0_67, %c4_68, %c0_69] : memref<1x16x128xf32, #tpu.memory_space<vmem>>, vector<1x4x128xf32>
    %115 = vector.shape_cast %114 : vector<1x4x128xf32> to vector<4x128xf32>
    %c0_70 = arith.constant 0 : index
    %c4_71 = arith.constant 4 : index
    %c0_72 = arith.constant 0 : index
    %116 = vector.load %arg5[%c0_70, %c4_71, %c0_72] : memref<1x16x128xf32, #tpu.memory_space<vmem>>, vector<1x4x128xf32>
    %117 = vector.shape_cast %116 : vector<1x4x128xf32> to vector<4x128xf32>
    %118 = vector.broadcast %111 : vector<1x128xf32> to vector<4x128xf32>
    %119 = arith.mulf %118, %115 : vector<4x128xf32>
    %120 = arith.addf %103, %119 : vector<4x128xf32>
    %121 = vector.broadcast %113 : vector<1x128xf32> to vector<4x128xf32>
    %122 = arith.mulf %121, %117 : vector<4x128xf32>
    %123 = arith.subf %120, %122 : vector<4x128xf32>
    %124 = vector.broadcast %111 : vector<1x128xf32> to vector<4x128xf32>
    %125 = arith.mulf %124, %117 : vector<4x128xf32>
    %126 = arith.addf %109, %125 : vector<4x128xf32>
    %127 = vector.broadcast %113 : vector<1x128xf32> to vector<4x128xf32>
    %128 = arith.mulf %127, %115 : vector<4x128xf32>
    %129 = arith.addf %126, %128 : vector<4x128xf32>
    %c0_73 = arith.constant 0 : index
    %c6 = arith.constant 6 : index
    %c0_74 = arith.constant 0 : index
    %130 = vector.load %arg2[%c0_73, %c6, %c0_74] : memref<1x8x128xf32, #tpu.memory_space<vmem>>, vector<1x1x128xf32>
    %131 = vector.shape_cast %130 : vector<1x1x128xf32> to vector<1x128xf32>
    %c0_75 = arith.constant 0 : index
    %c6_76 = arith.constant 6 : index
    %c0_77 = arith.constant 0 : index
    %132 = vector.load %arg3[%c0_75, %c6_76, %c0_77] : memref<1x8x128xf32, #tpu.memory_space<vmem>>, vector<1x1x128xf32>
    %133 = vector.shape_cast %132 : vector<1x1x128xf32> to vector<1x128xf32>
    %c0_78 = arith.constant 0 : index
    %c8_79 = arith.constant 8 : index
    %c0_80 = arith.constant 0 : index
    %134 = vector.load %arg4[%c0_78, %c8_79, %c0_80] : memref<1x16x128xf32, #tpu.memory_space<vmem>>, vector<1x4x128xf32>
    %135 = vector.shape_cast %134 : vector<1x4x128xf32> to vector<4x128xf32>
    %c0_81 = arith.constant 0 : index
    %c8_82 = arith.constant 8 : index
    %c0_83 = arith.constant 0 : index
    %136 = vector.load %arg5[%c0_81, %c8_82, %c0_83] : memref<1x16x128xf32, #tpu.memory_space<vmem>>, vector<1x4x128xf32>
    %137 = vector.shape_cast %136 : vector<1x4x128xf32> to vector<4x128xf32>
    %138 = vector.broadcast %131 : vector<1x128xf32> to vector<4x128xf32>
    %139 = arith.mulf %138, %135 : vector<4x128xf32>
    %140 = arith.addf %123, %139 : vector<4x128xf32>
    %141 = vector.broadcast %133 : vector<1x128xf32> to vector<4x128xf32>
    %142 = arith.mulf %141, %137 : vector<4x128xf32>
    %143 = arith.subf %140, %142 : vector<4x128xf32>
    %144 = vector.broadcast %131 : vector<1x128xf32> to vector<4x128xf32>
    %145 = arith.mulf %144, %137 : vector<4x128xf32>
    %146 = arith.addf %129, %145 : vector<4x128xf32>
    %147 = vector.broadcast %133 : vector<1x128xf32> to vector<4x128xf32>
    %148 = arith.mulf %147, %135 : vector<4x128xf32>
    %149 = arith.addf %146, %148 : vector<4x128xf32>
    %c0_84 = arith.constant 0 : index
    %c7 = arith.constant 7 : index
    %c0_85 = arith.constant 0 : index
    %150 = vector.load %arg2[%c0_84, %c7, %c0_85] : memref<1x8x128xf32, #tpu.memory_space<vmem>>, vector<1x1x128xf32>
    %151 = vector.shape_cast %150 : vector<1x1x128xf32> to vector<1x128xf32>
    %c0_86 = arith.constant 0 : index
    %c7_87 = arith.constant 7 : index
    %c0_88 = arith.constant 0 : index
    %152 = vector.load %arg3[%c0_86, %c7_87, %c0_88] : memref<1x8x128xf32, #tpu.memory_space<vmem>>, vector<1x1x128xf32>
    %153 = vector.shape_cast %152 : vector<1x1x128xf32> to vector<1x128xf32>
    %c0_89 = arith.constant 0 : index
    %c12_90 = arith.constant 12 : index
    %c0_91 = arith.constant 0 : index
    %154 = vector.load %arg4[%c0_89, %c12_90, %c0_91] : memref<1x16x128xf32, #tpu.memory_space<vmem>>, vector<1x4x128xf32>
    %155 = vector.shape_cast %154 : vector<1x4x128xf32> to vector<4x128xf32>
    %c0_92 = arith.constant 0 : index
    %c12_93 = arith.constant 12 : index
    %c0_94 = arith.constant 0 : index
    %156 = vector.load %arg5[%c0_92, %c12_93, %c0_94] : memref<1x16x128xf32, #tpu.memory_space<vmem>>, vector<1x4x128xf32>
    %157 = vector.shape_cast %156 : vector<1x4x128xf32> to vector<4x128xf32>
    %158 = vector.broadcast %151 : vector<1x128xf32> to vector<4x128xf32>
    %159 = arith.mulf %158, %155 : vector<4x128xf32>
    %160 = arith.addf %143, %159 : vector<4x128xf32>
    %161 = vector.broadcast %153 : vector<1x128xf32> to vector<4x128xf32>
    %162 = arith.mulf %161, %157 : vector<4x128xf32>
    %163 = arith.subf %160, %162 : vector<4x128xf32>
    %164 = vector.broadcast %151 : vector<1x128xf32> to vector<4x128xf32>
    %165 = arith.mulf %164, %157 : vector<4x128xf32>
    %166 = arith.addf %149, %165 : vector<4x128xf32>
    %167 = vector.broadcast %153 : vector<1x128xf32> to vector<4x128xf32>
    %168 = arith.mulf %167, %155 : vector<4x128xf32>
    %169 = arith.addf %166, %168 : vector<4x128xf32>
    %c0_95 = arith.constant 0 : index
    %c4_96 = arith.constant 4 : index
    %c0_97 = arith.constant 0 : index
    %170 = vector.load %arg6[%c0_95, %c4_96, %c0_97] : memref<1x8x128xf32, #tpu.memory_space<vmem>>, vector<1x4x128xf32>
    %171 = vector.shape_cast %170 : vector<1x4x128xf32> to vector<4x128xf32>
    %172 = vector.shape_cast %163 : vector<4x128xf32> to vector<1x4x128xf32>
    tpu.vector_store %arg6[%c0_95, %c4_96, %c0_97], %172 {strides = array<i32>} : memref<1x8x128xf32, #tpu.memory_space<vmem>>, vector<1x4x128xf32>,
    %c0_98 = arith.constant 0 : index
    %c4_99 = arith.constant 4 : index
    %c0_100 = arith.constant 0 : index
    %173 = vector.load %arg7[%c0_98, %c4_99, %c0_100] : memref<1x8x128xf32, #tpu.memory_space<vmem>>, vector<1x4x128xf32>
    %174 = vector.shape_cast %173 : vector<1x4x128xf32> to vector<4x128xf32>
    %175 = vector.shape_cast %169 : vector<4x128xf32> to vector<1x4x128xf32>
    tpu.vector_store %arg7[%c0_98, %c4_99, %c0_100], %175 {strides = array<i32>} : memref<1x8x128xf32, #tpu.memory_space<vmem>>, vector<1x4x128xf32>,
    return
  }
  func.func @transform_0(%arg0: i32, %arg1: i32) -> (i32, i32, i32) {
    %c0_i32 = arith.constant 0 : i32
    %c0_i32_0 = arith.constant 0 : i32
    return %arg0, %c0_i32, %arg1 : i32, i32, i32
  }
  func.func @transform_1(%arg0: i32, %arg1: i32) -> (i32, i32, i32) {
    %c0_i32 = arith.constant 0 : i32
    %c0_i32_0 = arith.constant 0 : i32
    return %arg0, %c0_i32, %arg1 : i32, i32, i32
  }
  func.func @transform_2(%arg0: i32, %arg1: i32) -> (i32, i32, i32) {
    %c0_i32 = arith.constant 0 : i32
    %c0_i32_0 = arith.constant 0 : i32
    return %arg0, %c0_i32, %arg1 : i32, i32, i32
  }
  func.func @transform_3(%arg0: i32, %arg1: i32) -> (i32, i32, i32) {
    %c0_i32 = arith.constant 0 : i32
    %c0_i32_0 = arith.constant 0 : i32
    return %arg0, %c0_i32, %arg1 : i32, i32, i32
  }
  func.func @transform_4(%arg0: i32, %arg1: i32) -> (i32, i32, i32) {
    %c0_i32 = arith.constant 0 : i32
    %c0_i32_0 = arith.constant 0 : i32
    return %arg0, %c0_i32, %arg1 : i32, i32, i32
  }
  func.func @transform_5(%arg0: i32, %arg1: i32) -> (i32, i32, i32) {
    %c0_i32 = arith.constant 0 : i32
    %c0_i32_0 = arith.constant 0 : i32
    return %arg0, %c0_i32, %arg1 : i32, i32, i32
  }
}

</mosaic_0001>

<bundles_post_ra>
// kernel: reverse.0
= control target key start
LH: loop header
LB: loop body
LE: loop exit
PB: predicated region body
PF: predicated region fallthrough
CT: control target
= control target key end

     0   :  { %v71_v3 = vlaneseq  ;;  %v64_v9 = vld [vmem:[#allocation0 + $0x7] ss:$-1 sm:$0xff]  ;;  %v78_v12 = vld [vmem:[#allocation0 + $0x17] ss:$-1 sm:$0xff]  ;;  %s329_s0 = inlined_call_operand.vmem [shape: f32[2,4,16,7], index: 0, kind: input, shape index: {}]   ;;  %s330_s1 = inlined_call_operand.vmem [shape: f32[2,4,16,7], index: 1, kind: output, shape index: {}]  }
   0x1   :  { %v44_v0 = vld [vmem:[%s329_s0] sm:$0xff]  ;;  %v46_v1 = vld [vmem:[%s329_s0 + $0x8] sm:$0xff]  ;;  %v48_v2 = vld [vmem:[%s329_s0 + $0x10] sm:$0xff]  ;;  %v65_v10 = vrot.slane %v64_v9, 1  ;;  %v79_v14 = vrot.slane %v78_v12, 1 }
   0x2   :  { %45 = vst [vmem:[#allocation0 + $0x8] sm:$0xff] %v44_v0  ;;  %47 = vst [vmem:[#allocation0 + $0x18] sm:$0xff] %v46_v1  ;;  %v50_v4 = vld [vmem:[%s329_s0 + $0x18] sm:$0xff]  ;;  %v52_v5 = vld [vmem:[%s329_s0 + $0x20] sm:$0xff]  ;;  %v72_v11 = vshrl.u32 %v71_v3, 7 }
   0x3   :  { %49 = vst [vmem:[#allocation0 + $0x28] sm:$0xff] %v48_v2  ;;  %v54_v6 = vld [vmem:[%s329_s0 + $0x28] sm:$0xff]  ;;  %51 = vst [vmem:[#allocation0 + $0x38] sm:$0xff] %v50_v4  ;;  %v56_v7 = vld [vmem:[%s329_s0 + $0x30] sm:$0xff] }
   0x4   :  { %53 = vst [vmem:[#allocation0 + $0x48] sm:$0xff] %v52_v5  ;;  %55 = vst [vmem:[#allocation0 + $0x58] sm:$0xff] %v54_v6  ;;  %v58_v8 = vld [vmem:[%s329_s0 + $0x38] sm:$0xff]  ;;  %v92_v13 = vld [vmem:[#allocation0 + $0x27] ss:$-1 sm:$0xff]  ;;  %vm73_vm0 = vcmp.lt.s32.totalorder %v72_v11, 7 }
   0x5   :  { %57 = vst [vmem:[#allocation0 + $0x68] sm:$0xff] %v56_v7  ;;  %59 = vst [vmem:[#allocation0 + $0x78] sm:$0xff] %v58_v8  ;;  %v93_v15 = vrot.slane %v92_v13, 1  ;;  %v106_v16 = vld [vmem:[#allocation0 + $0x37] ss:$-1 sm:$0xff] }
   0x6   :  { %66 = vst [vmem:[#allocation1] sm:$0xff] %v65_v10  ;;  %v107_v17 = vrot.slane %v106_v16, 1  ;;  %v120_v18 = vld [vmem:[#allocation0 + $0x47] ss:$-1 sm:$0xff]  ;;  %v134_v19 = vld [vmem:[#allocation0 + $0x57] ss:$-1 sm:$0xff] }
   0x7   :  { %80 = vst [vmem:[#allocation1 + $0x8] sm:$0xff] %v79_v14  ;;  %94 = vst [vmem:[#allocation1 + $0x10] sm:$0xff] %v93_v15  ;;  %v121_v20 = vrot.slane %v120_v18, 1  ;;  %v135_v21 = vrot.slane %v134_v19, 1  ;;  %v148_v22 = vld [vmem:[#allocation0 + $0x67] ss:$-1 sm:$0xff] }
   0x8   :  { %v162_v23 = vld [vmem:[#allocation0 + $0x77] ss:$-1 sm:$0xff]  ;;  %108 = vst [vmem:[#allocation1 + $0x18] sm:$0xff] %v107_v17  ;;  %v149_v24 = vrot.slane %v148_v22, 1 }
   0x9   :  { %v163_v25 = vrot.slane %v162_v23, 1  ;;  %v69_v26 = vld [vmem:[#allocation0 + $0xf] ss:$-1 sm:$0xff]  ;;  %v83_v27 = vld [vmem:[#allocation0 + $0x1f] ss:$-1 sm:$0xff]  ;;  %122 = vst [vmem:[#allocation1 + $0x20] sm:$0xff] %v121_v20 }
   0xa   :  { %v97_v28 = vld [vmem:[#allocation0 + $0x2f] ss:$-1 sm:$0xff]  ;;  %136 = vst [vmem:[#allocation1 + $0x28] sm:$0xff] %v135_v21  ;;  %v70_v29 = vrot.slane %v69_v26, 1  ;;  %v84_v30 = vrot.slane %v83_v27, 1  ;;  %150 = vst [vmem:[#allocation1 + $0x30] sm:$0xff] %v149_v24 }
   0xb   :  { %v98_v31 = vrot.slane %v97_v28, 1  ;;  %v111_v32 = vld [vmem:[#allocation0 + $0x3f] ss:$-1 sm:$0xff]  ;;  %164 = vst [vmem:[#allocation1 + $0x38] sm:$0xff] %v163_v25  ;;  %v125_v34 = vld [vmem:[#allocation0 + $0x4f] ss:$-1 sm:$0xff] }
   0xc   :  { %v112_v33 = vrot.slane %v111_v32, 1  ;;  %v139_v35 = vld [vmem:[#allocation0 + $0x5f] ss:$-1 sm:$0xff]  ;;  %74 = vst.msk [vmem:[#allocation1] sm:$0xff] %vm73_vm0, %v70_v29  ;;  %88 = vst.msk [vmem:[#allocation1 + $0x8] sm:$0xff] %vm73_vm0, %v84_v30  ;;  %v126_v36 = vrot.slane %v125_v34, 1 }
   0xd   :  { %102 = vst.msk [vmem:[#allocation1 + $0x10] sm:$0xff] %vm73_vm0, %v98_v31  ;;  %v140_v37 = vrot.slane %v139_v35, 1  ;;  %v153_v38 = vld [vmem:[#allocation0 + $0x6f] ss:$-1 sm:$0xff]  ;;  %v167_v39 = vld [vmem:[#allocation0 + $0x7f] ss:$-1 sm:$0xff] }
   0xe   :  { %116 = vst.msk [vmem:[#allocation1 + $0x18] sm:$0xff] %vm73_vm0, %v112_v33  ;;  %v154_v40 = vrot.slane %v153_v38, 1  ;;  %v168_v41 = vrot.slane %v167_v39, 1  ;;  %130 = vst.msk [vmem:[#allocation1 + $0x20] sm:$0xff] %vm73_vm0, %v126_v36 }
   0xf   :  { %144 = vst.msk [vmem:[#allocation1 + $0x28] sm:$0xff] %vm73_vm0, %v140_v37 }
  0x10   :  { %158 = vst.msk [vmem:[#allocation1 + $0x30] sm:$0xff] %vm73_vm0, %v154_v40  ;;  %172 = vst.msk [vmem:[#allocation1 + $0x38] sm:$0xff] %vm73_vm0, %v168_v41 }
  0x13   :  { %v214_v42 = vld [vmem:[#allocation1] sm:$0xff]  ;;  %v216_v43 = vld [vmem:[#allocation1 + $0x8] sm:$0xff] }
  0x14   :  { %v218_v44 = vld [vmem:[#allocation1 + $0x10] sm:$0xff]  ;;  %215 = vst [vmem:[%s330_s1] sm:$0xff] %v214_v42  ;;  %217 = vst [vmem:[%s330_s1 + $0x8] sm:$0xff] %v216_v43 }
  0x15   :  { %219 = vst [vmem:[%s330_s1 + $0x10] sm:$0xff] %v218_v44  ;;  %v220_v45 = vld [vmem:[#allocation1 + $0x18] sm:$0xff]  ;;  %v222_v46 = vld [vmem:[#allocation1 + $0x20] sm:$0xff] }
  0x16   :  { %221 = vst [vmem:[%s330_s1 + $0x18] sm:$0xff] %v220_v45  ;;  %v224_v47 = vld [vmem:[#allocation1 + $0x28] sm:$0xff]  ;;  %223 = vst [vmem:[%s330_s1 + $0x20] sm:$0xff] %v222_v46 }
  0x17   :  { %225 = vst [vmem:[%s330_s1 + $0x28] sm:$0xff] %v224_v47  ;;  %v226_v48 = vld [vmem:[#allocation1 + $0x30] sm:$0xff]  ;;  %v228_v49 = vld [vmem:[#allocation1 + $0x38] sm:$0xff] }
  0x18   :  { %227 = vst [vmem:[%s330_s1 + $0x30] sm:$0xff] %v226_v48  ;;  %229 = vst [vmem:[%s330_s1 + $0x38] sm:$0xff] %v228_v49 }

// kernel: spectral_conv2d.1
= control target key start
LH: loop header
LB: loop body
LE: loop exit
PB: predicated region body
PF: predicated region fallthrough
CT: control target
= control target key end

     0   :  { %s801_s18 = smov 0   ;;  %s803_s19 = smov 0   ;;  %s892_s0 = inlined_call_operand.vmem [shape: f32[2,8,128], index: 0, kind: input, shape index: {}]   ;;  %s893_s1 = inlined_call_operand.vmem [shape: f32[2,8,128], index: 1, kind: input, shape index: {}]   ;;  %s894_s2 = inlined_call_operand.vmem [shape: f32[2,16,128], index: 2, kind: input, shape index: {}]   ;;  %s895_s3 = inlined_call_operand.vmem [shape: f32[2,16,128], index: 3, kind: input, shape index: {}]   ;;  %s896_s4 = inlined_call_operand.vmem [shape: f32[2,8,128], index: 4, kind: output, shape index: {0}]   ;;  %s897_s5 = inlined_call_operand.vmem [shape: f32[2,8,128], index: 5, kind: output, shape index: {1}]  }
   0x1   :  { %s805_s20 = smov 0  }
   0x2 LB: > { %s28_s21 = sadd.s32 1, %s765_s19  ;;  %p694_p0 = scmp.ge.s32.totalorder %s769_s20, 1  ;;  %s769_s20 = sphi %s805_s20, %s16_s20   ;;  %s765_s19 = sphi %s803_s19, %s899_s19   ;;  %s761_s18 = sphi %s801_s18, %s898_s18  }
   0x3   : > { %p30_p1 = scmp.ge.s32.totalorder %s28_s21, 2  ;;  %p254_p2 = scmp.lt.s32.totalorder %s769_s20, 3 }
   0x5   : > { %s901_s21 = smov (%p30_p1, %s28_s21), 0  ;;  %p255_p3 = pnand %p694_p0, %p254_p2 }
   0x6   : > { %p316_p4 = scmp.lt.s32.totalorder (!%p255_p3), %s761_s18, 1 }
   0x7   : > { %258 = sbr.rel (%p255_p3) target bundleno = 41 (0x29), region = 36 }
   0xe   : > { %s903_s18 = smov (!%p316_p4, %s761_s18), 1 }
   0xf   : > { %s819_s22 = sshll.u32 %s903_s18, 3  ;;  %s721_s23 = sshll.u32 %s903_s18, 4 }
  0x10   : > { %s825_s26 = scalar_lea.vmem %s892_s0, %s819_s22  ;;  %s831_s29 = scalar_lea.vmem %s893_s1, %s819_s22 }
  0x11   : > { %s836_s7 = scalar_lea.vmem %s894_s2, %s721_s23  ;;  %s841_s10 = scalar_lea.vmem %s895_s3, %s721_s23  ;;  %v703_v0 = vld [vmem:[%s825_s26] ss:$0 sm:$0xff]  ;;  %v705_v2 = vld [vmem:[%s825_s26 + $0x1] ss:$0 sm:$0xff]  ;;  %v707_v10 = vld [vmem:[%s825_s26 + $0x2] ss:$0 sm:$0xff] }
  0x12   : > { %v704_v1 = vld [vmem:[%s831_s29] ss:$0 sm:$0xff]  ;;  %v706_v5 = vld [vmem:[%s831_s29 + $0x1] ss:$0 sm:$0xff]  ;;  %v382_v8 = vld [vmem:[%s836_s7 + $0x4] sm:$0xf]  ;;  %s352_s13 = scalar_lea.vmem %s896_s4, %s819_s22  ;;  %s359_s16 = scalar_lea.vmem %s897_s5, %s819_s22 }
  0x13   : > { %v362_v3 = vld [vmem:[%s836_s7] sm:$0xf]  ;;  %v383_v9 = vld [vmem:[%s841_s10 + $0x4] sm:$0xf]  ;;  %v388_v13 = vmul.f32 %v705_v2, %v382_v8  ;;  %v402_v15 = vld [vmem:[%s836_s7 + $0x8] sm:$0xf]  ;;  %v398_v23 = vmul.f32 %v706_v5, %v382_v8 }
  0x14   : > { %v363_v4 = vld [vmem:[%s841_s10] sm:$0xf]  ;;  %v368_v6 = vmul.f32 %v703_v0, %v362_v3  ;;  %v378_v12 = vmul.f32 %v704_v1, %v362_v3  ;;  %v403_v16 = vld [vmem:[%s841_s10 + $0x8] sm:$0xf]  ;;  %v396_v17 = vmul.f32 %v705_v2, %v383_v9  ;;  %v394_v19 = vmul.f32 %v706_v5, %v383_v9  ;;  %v422_v21 = vld [vmem:[%s836_s7 + $0xc] sm:$0xf] }
  0x15   : > { %v374_v7 = vmul.f32 %v704_v1, %v363_v4  ;;  %v376_v11 = vmul.f32 %v703_v0, %v363_v4  ;;  %v708_v14 = vld [vmem:[%s831_s29 + $0x2] ss:$0 sm:$0xff]  ;;  %v709_v20 = vld [vmem:[%s825_s26 + $0x3] ss:$0 sm:$0xff]  ;;  %v408_v24 = vmul.f32 %v707_v10, %v402_v15  ;;  %v423_v26 = vld [vmem:[%s841_s10 + $0xc] sm:$0xf]  ;;  %v416_v32 = vmul.f32 %v707_v10, %v403_v16 }
  0x16   : > { %v414_v25 = vmul.f32 %v708_v14, %v403_v16  ;;  %v711_v27 = vld [vmem:[%s825_s26 + $0x4] ss:$0 sm:$0xff]  ;;  %v428_v30 = vmul.f32 %v709_v20, %v422_v21  ;;  %v444_v33 = vld [vmem:[%s836_s7] sm:$0xf]  ;;  %v713_v35 = vld [vmem:[%s825_s26 + $0x5] ss:$0 sm:$0xff]  ;;  %v418_v46 = vmul.f32 %v708_v14, %v402_v15  ;;  %v436_v57 = vmul.f32 %v709_v20, %v423_v26 }
  0x17   : > { %v375_v18 = vsub.f32 %v368_v6, %v374_v7  ;;  %v379_v22 = vadd.f32 %v378_v12, %v376_v11  ;;  %v712_v28 = vld [vmem:[%s831_s29 + $0x4] ss:$0 sm:$0xff]  ;;  %v445_v34 = vld [vmem:[%s841_s10] sm:$0xf]  ;;  %v450_v36 = vmul.f32 %v711_v27, %v444_v33  ;;  %v714_v38 = vld [vmem:[%s831_s29 + $0x5] ss:$0 sm:$0xff] }
  0x18   : > { %v456_v37 = vmul.f32 %v712_v28, %v445_v34  ;;  %v464_v39 = vld [vmem:[%s836_s7 + $0x4] sm:$0xf]  ;;  %v458_v41 = vmul.f32 %v711_v27, %v445_v34  ;;  %v460_v42 = vmul.f32 %v712_v28, %v444_v33  ;;  %v710_v44 = vld [vmem:[%s831_s29 + $0x3] ss:$0 sm:$0xff]  ;;  %v484_v49 = vld [vmem:[%s836_s7 + $0x8] sm:$0xf] }
  0x19   : > { %v389_v29 = vadd.f32 %v388_v13, %v375_v18  ;;  %v397_v31 = vadd.f32 %v396_v17, %v379_v22  ;;  %v465_v40 = vld [vmem:[%s841_s10 + $0x4] sm:$0xf]  ;;  %v470_v47 = vmul.f32 %v713_v35, %v464_v39  ;;  %v485_v52 = vld [vmem:[%s841_s10 + $0x8] sm:$0xf]  ;;  %v480_v59 = vmul.f32 %v714_v38, %v464_v39  ;;  %v504_v4 = vld [vmem:[%s836_s7 + $0xc] sm:$0xf] }
  0x1a   : > { %v715_v48 = vld [vmem:[%s825_s26 + $0x6] ss:$0 sm:$0xff]  ;;  %v457_v50 = vsub.f32 %v450_v36, %v456_v37  ;;  %v476_v51 = vmul.f32 %v714_v38, %v465_v40  ;;  %v461_v53 = vadd.f32 %v460_v42, %v458_v41  ;;  %v478_v54 = vmul.f32 %v713_v35, %v465_v40  ;;  %v717_v3 = vld [vmem:[%s825_s26 + $0x7] ss:$0 sm:$0xff]  ;;  %v505_v5 = vld [vmem:[%s841_s10 + $0xc] sm:$0xf] }
  0x1b   : > { %v395_v43 = vsub.f32 %v389_v29, %v394_v19  ;;  %v399_v45 = vadd.f32 %v398_v23, %v397_v31  ;;  %v716_v58 = vld [vmem:[%s831_s29 + $0x6] ss:$0 sm:$0xff]  ;;  %v438_v60 = vmul.f32 %v710_v44, %v422_v21  ;;  %v490_v62 = vmul.f32 %v715_v48, %v484_v49  ;;  %v718_v13 = vld [vmem:[%s831_s29 + $0x7] ss:$0 sm:$0xff] }
  0x1c   : > { %v471_v61 = vadd.f32 %v470_v47, %v457_v50  ;;  %v479_v63 = vadd.f32 %v478_v54, %v461_v53  ;;  %v434_v1 = vmul.f32 %v710_v44, %v423_v26  ;;  %v498_v6 = vmul.f32 %v715_v48, %v485_v52 }
  0x1d   : > { %v409_v55 = vadd.f32 %v408_v24, %v395_v43  ;;  %v417_v56 = vadd.f32 %v416_v32, %v399_v45  ;;  %v496_v8 = vmul.f32 %v716_v58, %v485_v52  ;;  %v500_v10 = vmul.f32 %v716_v58, %v484_v49 }
  0x1e   : > { %v477_v7 = vsub.f32 %v471_v61, %v476_v51  ;;  %v481_v9 = vadd.f32 %v480_v59, %v479_v63  ;;  %v510_v15 = vmul.f32 %v717_v3, %v504_v4  ;;  %v518_v17 = vmul.f32 %v717_v3, %v505_v5 }
  0x1f   : > { %v415_v0 = vsub.f32 %v409_v55, %v414_v25  ;;  %v419_v2 = vadd.f32 %v418_v46, %v417_v56  ;;  %v516_v21 = vmul.f32 %v718_v13, %v505_v5  ;;  %v520_v23 = vmul.f32 %v718_v13, %v504_v4 }
  0x20   : > { %v491_v14 = vadd.f32 %v490_v62, %v477_v7  ;;  %v499_v16 = vadd.f32 %v498_v6, %v481_v9 }
  0x21   : > { %v429_v11 = vadd.f32 %v428_v30, %v415_v0  ;;  %v437_v12 = vadd.f32 %v436_v57, %v419_v2 }
  0x22   : > { %v497_v20 = vsub.f32 %v491_v14, %v496_v8  ;;  %v501_v22 = vadd.f32 %v500_v10, %v499_v16 }
  0x23   : > { %v435_v18 = vsub.f32 %v429_v11, %v434_v1  ;;  %v439_v19 = vadd.f32 %v438_v60, %v437_v12 }
  0x24   : > { %v511_v24 = vadd.f32 %v510_v15, %v497_v20  ;;  %v519_v25 = vadd.f32 %v518_v17, %v501_v22 }
  0x25   : > { %440 = vst [vmem:[%s352_s13] sm:$0xf] %v435_v18  ;;  %441 = vst [vmem:[%s359_s16] sm:$0xf] %v439_v19 }
  0x26   : > { %v517_v26 = vsub.f32 %v511_v24, %v516_v21  ;;  %v521_v27 = vadd.f32 %v520_v23, %v519_v25 }
  0x28   : > { %522 = vst [vmem:[%s352_s13 + $0x4] sm:$0xf] %v517_v26  ;;  %523 = vst [vmem:[%s359_s16 + $0x4] sm:$0xf] %v521_v27 }
  0x29 PF: > { %s16_s20 = sadd.s32 1, %s769_s20   ;;  %s898_s18 = smov %s765_s19 }
  0x2a   : > { %p13_p5 = scmp.ge.s32.totalorder %s16_s20, 4   ;;  %s899_s19 = smov %s901_s21 }
  0x2c   :  { %15 = sbr.rel (!%p13_p5) target bundleno = 2 (0x2), region = 87 }

</bundles_post_ra>
